<compile_context>
chip_gen: v7x
topology: tpu7x:2x2x1
jax: 0.10.0
libtpu: 0.0.40
codegen_flags: <defaults>
</compile_context>

<pallas_src>
import functools

import jax
import jax.numpy as jnp
from jax.experimental import pallas as pl
from jax.experimental.pallas import tpu as pltpu

LANE = 128            # lane width for hidden/output weight tiles
KPAD = 32             # padded input-feature width (covers CartPole F=4)
H1, H2 = 20, 10       # hidden sizes of DQNetwork
OUT_PAD = 32          # lanes stored by the kernel (>= n_actions, full-array last dim)
W_ROWS = KPAD + 2 * LANE   # packed weight-slab rows: 32 (w1) + 128 (w2) + 128 (w3)


def _round_up(x, m):
    return (x + m - 1) // m * m


def _cdiv(a, b):
    return -(-a // b)


def _tile_plan(batch, block_b):
    """Batch tile size / padded batch / grid steps (all multiples of 8)."""
    block_b = max(8, _round_up(int(block_b), 8))       # (8,128) constraint safety
    b8 = _round_up(batch, 8)
    # Force >=2 grid steps when there are >=2 row-tiles so v7x's two TensorCores
    # both get work on the "parallel" axis (harmless extra step on v5e/v6e).
    n_steps = max(_cdiv(b8, block_b), 2 if b8 >= 16 else 1)
    tb = _round_up(_cdiv(b8, n_steps), 8)
    b_pad = n_steps * tb
    return tb, b_pad, n_steps


def _mlp_kernel(x_ref, w_ref, b_ref, o_ref):
    # x_ref: [TB, 32] bf16   w_ref: [288, 128] bf16   b_ref: [8, 128] f32
    # o_ref: [TB, 32] f32
    x = x_ref[...]

    # Layer 1: Linear(F, 20) + ReLU, K=32 contraction (padded lanes stay 0).
    h1 = jnp.dot(x, w_ref[0:KPAD, :], preferred_element_type=jnp.float32)
    h1 = jnp.maximum(h1 + b_ref[0:1, :], 0.0)

    # Layer 2: Linear(20, 10) + ReLU (K=128 tile, zero rows beyond 20).
    h2 = jnp.dot(h1.astype(jnp.bfloat16), w_ref[KPAD:KPAD + LANE, :],
                 preferred_element_type=jnp.float32)
    h2 = jnp.maximum(h2 + b_ref[1:2, :], 0.0)

    # Layer 3: Linear(10, n_actions), no activation.
    q = jnp.dot(h2.astype(jnp.bfloat16), w_ref[KPAD + LANE:KPAD + 2 * LANE, :],
                preferred_element_type=jnp.float32)
    q = q + b_ref[2:3, :]

    # Store only the first 32 lanes (>= n_actions) in f32: 4x less writeback
    # than a 128-lane f32 tile, no precision loss for the Q-values.
    o_ref[...] = q[:, :OUT_PAD].astype(o_ref.dtype)


def pack_params(params):
    """Pack (w1,b1,w2,b2,w3,b3) into a bf16 weight slab and an f32 bias slab.

    Call ONCE per parameter update (not per forward): the packed slabs are the
    kernel's parameter format.
    """
    w1, b1, w2, b2, w3, b3 = params

    def pad_w(w, k_pad):
        k, n = w.shape
        return jnp.zeros((k_pad, LANE), jnp.float32).at[:k, :n].set(w)

    def pad_b(b):
        b = jnp.asarray(b).reshape(1, -1)
        return jnp.zeros((1, LANE), jnp.float32).at[:, :b.shape[1]].set(b)

    w_slab = jnp.concatenate(
        [pad_w(w1, KPAD), pad_w(w2, LANE), pad_w(w3, LANE)],
        axis=0).astype(jnp.bfloat16)                      # [288, 128] bf16, 72 KiB
    b_slab = jnp.concatenate(
        [pad_b(b1), pad_b(b2), pad_b(b3), jnp.zeros((5, LANE), jnp.float32)],
        axis=0)                                           # [8, 128] f32, 4 KiB
    return w_slab, b_slab


@functools.partial(jax.jit, static_argnames=("n_actions", "block_b"))
def dqn_forward(x, w_slab, b_slab, *, n_actions, block_b=1024):
    """x: [B, in_features] f32; w_slab/b_slab from pack_params.

    Returns [B, n_actions] f32 Q-values.
    """
    B, F = x.shape
    tb, b_pad, n_steps = _tile_plan(B, block_b)

    # Pad x to 32 lanes only (4x less pad/DMA traffic than the old 128-lane pad).
    x_pad = jnp.zeros((b_pad, KPAD), jnp.bfloat16).at[:B, :F].set(
        x.astype(jnp.bfloat16))

    # Advisory cost hint for XLA scheduling when embedded in a larger train step.
    flops = 2 * b_pad * LANE * (KPAD + LANE + LANE)
    bytes_accessed = (b_pad * KPAD * 2            # x read (bf16)
                      + W_ROWS * LANE * 2         # weight slab (bf16)
                      + 8 * LANE * 4              # bias slab (f32)
                      + b_pad * OUT_PAD * 4)      # output write (f32)

    out = pl.pallas_call(
        _mlp_kernel,
        out_shape=jax.ShapeDtypeStruct((b_pad, OUT_PAD), jnp.float32),
        grid=(n_steps,),
        in_specs=[
            pl.BlockSpec((tb, KPAD), lambda i: (i, 0)),        # x batch tile
            pl.BlockSpec((W_ROWS, LANE), lambda i: (0, 0)),    # weight slab (const)
            pl.BlockSpec((8, LANE), lambda i: (0, 0)),         # bias slab (const)
        ],
        out_specs=pl.BlockSpec((tb, OUT_PAD), lambda i: (i, 0)),
        compiler_params=pltpu.CompilerParams(
            dimension_semantics=("parallel",)),
        cost_estimate=pl.CostEstimate(flops=flops, transcendentals=0,
                                      bytes_accessed=bytes_accessed),
    )(x_pad, w_slab, b_slab)

    return out[:B, :n_actions]


def init_params(key, in_features, n_actions):
    """Deterministic init mimicking PyTorch Linear's U(-1/sqrt(fan_in), 1/sqrt(fan_in))."""
    dims = [(in_features, H1), (H1, H2), (H2, n_actions)]
    params = []
    for fan_in, fan_out in dims:
        key, kw, kb = jax.random.split(key, 3)
        bound = 1.0 / jnp.sqrt(jnp.float32(fan_in))
        w = jax.random.uniform(kw, (fan_in, fan_out), jnp.float32, -bound, bound)
        b = jax.random.uniform(kb, (1, fan_out), jnp.float32, -bound, bound)
        params.extend([w, b])
    return tuple(params)


def dqn_forward_ref(x, params):
    w1, b1, w2, b2, w3, b3 = params
    h1 = jnp.maximum(x @ w1 + b1, 0.0)
    h2 = jnp.maximum(h1 @ w2 + b2, 0.0)
    return h2 @ w3 + b3


if __name__ == "__main__":
    key = jax.random.PRNGKey(0)
    in_features = 4   # CartPole observation size
    n_actions = 2     # CartPole action space
    batch = 8

    kx, kp = jax.random.split(key)
    x = jax.random.normal(kx, (batch, in_features), jnp.float32)
    params = init_params(kp, in_features, n_actions)

    # Pack once at parameter-update time (hoisted out of the forward path).
    w_slab, b_slab = pack_params(params)
    w_slab, b_slab = jax.block_until_ready((w_slab, b_slab))

    out = jax.block_until_ready(
        dqn_forward(x, w_slab, b_slab, n_actions=n_actions))
    ref = dqn_forward_ref(x, params)

    assert out.shape == (batch, n_actions)
    # bf16 MXU operands with f32 accumulation -> small tolerance vs f32 reference.
    assert jnp.allclose(out, ref, atol=5e-2, rtol=5e-2), "mismatch vs JAX reference"

    print("KERNEL_OK")
</pallas_src>

<mosaic_0001>
module attributes {stable_mosaic.version = 11 : i64} {
  func.func @_mlp_kernel(%arg0: i32, %arg1: memref<8x32xbf16, #tpu.memory_space<vmem>>, %arg2: memref<288x128xbf16, #tpu.memory_space<vmem>>, %arg3: memref<8x128xf32, #tpu.memory_space<vmem>>, %arg4: memref<8x32xf32, #tpu.memory_space<vmem>>) attributes {dimension_semantics = [#tpu.dimension_semantics<parallel>], iteration_bounds = array<i64: 1>, scalar_prefetch = 0 : i64, scratch_operands = 0 : i64, tpu.core_type = #tpu.core_type<tc>, window_params = [{transform_indices = @transform_0, window_bounds = array<i64: 8, 32>}, {pipeline_mode = #tpu.pipeline_mode<synchronous>, transform_indices = @transform_1, window_bounds = array<i64: 288, 128>}, {pipeline_mode = #tpu.pipeline_mode<synchronous>, transform_indices = @transform_2, window_bounds = array<i64: 8, 128>}, {transform_indices = @transform_3, window_bounds = array<i64: 8, 32>}]} {
    %c0 = arith.constant 0 : index
    %c0_0 = arith.constant 0 : index
    %0 = vector.load %arg1[%c0, %c0_0] : memref<8x32xbf16, #tpu.memory_space<vmem>>, vector<8x32xbf16>
    %c0_1 = arith.constant 0 : index
    %c0_2 = arith.constant 0 : index
    %1 = vector.load %arg2[%c0_1, %c0_2] : memref<288x128xbf16, #tpu.memory_space<vmem>>, vector<32x128xbf16>
    %cst = arith.constant dense<0.000000e+00> : vector<8x128xf32>
    %2 = tpu.matmul %0, %1, %cst {dimension_numbers = #tpu.dot_dimension_numbers<[1], [0], [0], [1], [0, 0, 1, 1], [], []>} : vector<8x32xbf16>, vector<32x128xbf16>, vector<8x128xf32> -> vector<8x128xf32>
    %c0_3 = arith.constant 0 : index
    %c0_4 = arith.constant 0 : index
    %3 = vector.load %arg3[%c0_3, %c0_4] : memref<8x128xf32, #tpu.memory_space<vmem>>, vector<1x128xf32>
    %4 = vector.broadcast %3 : vector<1x128xf32> to vector<8x128xf32>
    %5 = arith.addf %2, %4 : vector<8x128xf32>
    %cst_5 = arith.constant 0.000000e+00 : f32
    %6 = vector.broadcast %cst_5 : f32 to vector<8x128xf32>
    %7 = arith.maximumf %5, %6 : vector<8x128xf32>
    %8 = arith.truncf %7 : vector<8x128xf32> to vector<8x128xbf16>
    %c32 = arith.constant 32 : index
    %c0_6 = arith.constant 0 : index
    %9 = vector.load %arg2[%c32, %c0_6] : memref<288x128xbf16, #tpu.memory_space<vmem>>, vector<128x128xbf16>
    %cst_7 = arith.constant dense<0.000000e+00> : vector<8x128xf32>
    %10 = tpu.matmul %8, %9, %cst_7 {dimension_numbers = #tpu.dot_dimension_numbers<[1], [0], [0], [1], [0, 0, 1, 1], [], []>} : vector<8x128xbf16>, vector<128x128xbf16>, vector<8x128xf32> -> vector<8x128xf32>
    %c1 = arith.constant 1 : index
    %c0_8 = arith.constant 0 : index
    %11 = vector.load %arg3[%c1, %c0_8] : memref<8x128xf32, #tpu.memory_space<vmem>>, vector<1x128xf32>
    %12 = vector.broadcast %11 : vector<1x128xf32> to vector<8x128xf32>
    %13 = arith.addf %10, %12 : vector<8x128xf32>
    %cst_9 = arith.constant 0.000000e+00 : f32
    %14 = vector.broadcast %cst_9 : f32 to vector<8x128xf32>
    %15 = arith.maximumf %13, %14 : vector<8x128xf32>
    %16 = arith.truncf %15 : vector<8x128xf32> to vector<8x128xbf16>
    %c160 = arith.constant 160 : index
    %c0_10 = arith.constant 0 : index
    %17 = vector.load %arg2[%c160, %c0_10] : memref<288x128xbf16, #tpu.memory_space<vmem>>, vector<128x128xbf16>
    %cst_11 = arith.constant dense<0.000000e+00> : vector<8x128xf32>
    %18 = tpu.matmul %16, %17, %cst_11 {dimension_numbers = #tpu.dot_dimension_numbers<[1], [0], [0], [1], [0, 0, 1, 1], [], []>} : vector<8x128xbf16>, vector<128x128xbf16>, vector<8x128xf32> -> vector<8x128xf32>
    %c2 = arith.constant 2 : index
    %c0_12 = arith.constant 0 : index
    %19 = vector.load %arg3[%c2, %c0_12] : memref<8x128xf32, #tpu.memory_space<vmem>>, vector<1x128xf32>
    %20 = vector.broadcast %19 : vector<1x128xf32> to vector<8x128xf32>
    %21 = arith.addf %18, %20 : vector<8x128xf32>
    %22 = vector.extract_strided_slice %21 {offsets = [0, 0], sizes = [8, 32], strides = [1, 1]} : vector<8x128xf32> to vector<8x32xf32>
    %c0_13 = arith.constant 0 : index
    %c0_14 = arith.constant 0 : index
    %23 = vector.load %arg4[%c0_13, %c0_14] : memref<8x32xf32, #tpu.memory_space<vmem>>, vector<8x32xf32>
    tpu.vector_store %arg4[%c0_13, %c0_14], %22 {strides = array<i32>} : memref<8x32xf32, #tpu.memory_space<vmem>>, vector<8x32xf32>,
    return
  }
  func.func @transform_0(%arg0: i32) -> (i32, i32) {
    %c0_i32 = arith.constant 0 : i32
    %c0_i32_0 = arith.constant 0 : i32
    return %arg0, %c0_i32 : i32, i32
  }
  func.func @transform_1(%arg0: i32) -> (i32, i32) {
    %c0_i32 = arith.constant 0 : i32
    %c0_i32_0 = arith.constant 0 : i32
    %c0_i32_1 = arith.constant 0 : i32
    return %c0_i32, %c0_i32_0 : i32, i32
  }
  func.func @transform_2(%arg0: i32) -> (i32, i32) {
    %c0_i32 = arith.constant 0 : i32
    %c0_i32_0 = arith.constant 0 : i32
    %c0_i32_1 = arith.constant 0 : i32
    return %c0_i32, %c0_i32_0 : i32, i32
  }
  func.func @transform_3(%arg0: i32) -> (i32, i32) {
    %c0_i32 = arith.constant 0 : i32
    %c0_i32_0 = arith.constant 0 : i32
    return %arg0, %c0_i32 : i32, i32
  }
}

</mosaic_0001>

<bundles_post_ra>
// kernel: dqn_forward.1
= control target key start
LH: loop header
LB: loop body
LE: loop exit
PB: predicated region body
PF: predicated region fallthrough
CT: control target
= control target key end

     0   :  { %8 = vsyncpa [#allocation3], 0  ;;  %s461_s12 = smov [#allocation2]   ;;  %s539_s0 = inlined_call_operand.vmem [shape: bf16[8,32], index: 0, kind: input, shape index: {}]   ;;  %s540_s1 = inlined_call_operand.hbm [shape: bf16[288,128], index: 1, kind: input, shape index: {}]   ;;  %s541_s2 = inlined_call_operand.vmem [shape: f32[8,128], index: 2, kind: input, shape index: {}]   ;;  %s542_s3 = inlined_call_operand.vmem [shape: f32[8,32], index: 3, kind: output, shape index: {}]  }
   0x1   :  { %s16_s13 = sshll.u32 %s461_s12, 4  ;;  %s437_s16 = scalar_lea.hbm %s540_s1, 2304  ;;  %s17_s13 = int_to_ptr.vmem [resolvable:$true] %s16_s13 }
   0x2   :  { %p438_p0 = scmp.ne.s32.totalorder %s540_s1, %s437_s16  ;;  %p441_p1 = scmp.lt.u32.totalorder %s437_s16, %s540_s1 }
   0x4   :  { %p443_p2 = pnand %p441_p1, %p438_p0 }
   0x6   :  { %446 = shalt.err (!%p443_p2)
}
   0x7   :  { %s447_s21 = scalar_lea.vmem %s17_s13, 2304  ;;  %p452_p4 = scmp.lt.s32.totalorder %s17_s13, %s17_s13 }
   0x8   :  { %p448_p3 = scmp.ne.s32.totalorder %s17_s13, %s447_s21  ;;  %p453_p5 = scmp.lt.s32.totalorder %s447_s21, %s447_s21 }
   0xa   :  { %p454_p6 = por %p453_p5, %p452_p4 }
   0xc   :  { %p455_p7 = pnand %p454_p6, %p448_p3 }
   0xe   :  { %458 = shalt.err (!%p455_p7)
}
   0xf   :  { %s462_s22 = smov 64   ;;  %s463_s23 = smov 4  }
  0x10   :  { %22 = dma.hbm_to_vmem [thread:$0]  %s540_s1, 2304, %s17_s13, [#allocation3], %s462_s22, %s462_s22, %s463_s23  }
  0x11   :  { %459 = dma.done.wait [#allocation3], 2304  }
  0x12   :  { %460 = vsyncadd [#allocation3], 4294964992  ;;  %v464_v0 = vmov 0.0   ;;  %vm465_vm0 = vmmov 0   ;;  %v419_v1 = vld [vmem:[#allocation2] sm:$0xff]   ;;  %v420_v2 = vld [vmem:[#allocation2 + $0x8] sm:$0xff]  }
  0x13   :  { %366 = vmatprep.subr.bf16.mxu0 %v464_v0  ;;  %370 = vmatprep.mubr.msk.bf16.mxu0 %vm465_vm0, %v464_v0  ;;  %v421_v3 = vld [vmem:[#allocation2 + $0x10] sm:$0xff]   ;;  %vm51_vm1 = vcmask 261120   ;;  %v422_v4 = vld [vmem:[#allocation2 + $0x18] sm:$0xff]   ;;  %v29_v5 = vld [vmem:[%s539_s0] sm:$0xf] }
  0x14   :  { %374 = vmatprep.subr.bf16.mxu1 %v464_v0  ;;  %390 = vmatprep.mubr.msk.bf16.mxu1 %vm465_vm0, %v464_v0  ;;  %v423_v6 = vld [vmem:[#allocation2 + $0x20] sm:$0xff]   ;;  %v424_v7 = vld [vmem:[#allocation2 + $0x28] sm:$0xff]   ;;  %v425_v8 = vld [vmem:[#allocation2 + $0x30] sm:$0xff]  }
  0x15   :  { %367 = vmatpush3.bf16.msra.mxu0 %v419_v1  ;;  %375 = vmatpush3.bf16.msra.mxu1 %v421_v3  ;;  %v426_v9 = vld [vmem:[#allocation2 + $0x38] sm:$0xff]   ;;  %v427_v10 = vld [vmem:[#allocation2 + $0x40] sm:$0xff]   ;;  %v428_v11 = vld [vmem:[#allocation2 + $0x48] sm:$0xff]  }
  0x16   :  { %368 = vmatprep.subr.bf16.mxu0 %v464_v0  ;;  %376 = vmatprep.subr.bf16.mxu1 %v464_v0  ;;  %v429_v12 = vld [vmem:[#allocation2 + $0x50] sm:$0xff]   ;;  %v430_v13 = vld [vmem:[#allocation2 + $0x58] sm:$0xff]   ;;  %v431_v14 = vld [vmem:[#allocation2 + $0x60] sm:$0xff]  }
  0x17   :  { %v432_v15 = vld [vmem:[#allocation2 + $0x68] sm:$0xff]   ;;  %v433_v16 = vld [vmem:[#allocation2 + $0x70] sm:$0xff]   ;;  %v434_v17 = vld [vmem:[#allocation2 + $0x78] sm:$0xff]  }
  0x18   :  { %v323_v18 = vld [vmem:[%s541_s2] ss:$0 sm:$0xff]  ;;  %v436_v27 = vld [vmem:[#allocation2 + $0x88] sm:$0xff]   ;;  %v327_v28 = vld [vmem:[%s541_s2 + $0x1] ss:$0 sm:$0xff] }
  0x19   :  { %369 = vmatpush3.bf16.msra.mxu0 %v420_v2  ;;  %377 = vmatpush3.bf16.msra.mxu1 %v422_v4  ;;  %v435_v26 = vld [vmem:[#allocation2 + $0x80] sm:$0xff]  }
  0x1a   :  { %394 = vmatprep.subr.bf16.mxu0 %v464_v0  ;;  %378 = vmatprep.subr.bf16.mxu1 %v464_v0  ;;  %v336_v36 = vld [vmem:[%s541_s2 + $0x2] ss:$0 sm:$0xff] }
  0x1c   :  { %371 = vmatmul.mubr.msk.bf16.vlgmr.msra.gmra.mrb[0].mxu0 %vm51_vm1, %v29_v5 }
  0x1d   :  { %410 = vmatprep.mubr.msk.bf16.mxu0 %vm465_vm0, %v464_v0  ;;  %379 = vmatpush3.bf16.msra.mxu1 %v423_v6 }
  0x1e   :  { %380 = vmatprep.subr.bf16.mxu1 %v464_v0  ;;  %395 = vmatpush3.bf16.msra.mxu0 %v429_v12 }
  0x1f   :  { %396 = vmatprep.subr.bf16.mxu0 %v464_v0 }
  0x21   :  { %381 = vmatpush3.bf16.msra.mxu1 %v424_v7 }
  0x22   :  { %382 = vmatprep.subr.bf16.mxu1 %v464_v0  ;;  %397 = vmatpush3.bf16.msra.mxu0 %v430_v13 }
  0x23   :  { %398 = vmatprep.subr.bf16.mxu0 %v464_v0 }
  0x25   :  { %383 = vmatpush3.bf16.msra.mxu1 %v425_v8 }
  0x26   :  { %384 = vmatprep.subr.bf16.mxu1 %v464_v0  ;;  %399 = vmatpush3.bf16.msra.mxu0 %v431_v14 }
  0x27   :  { %400 = vmatprep.subr.bf16.mxu0 %v464_v0 }
  0x29   :  { %385 = vmatpush3.bf16.msra.mxu1 %v426_v9 }
  0x2a   :  { %386 = vmatprep.subr.bf16.mxu1 %v464_v0  ;;  %401 = vmatpush3.bf16.msra.mxu0 %v432_v15 }
  0x2b   :  { %402 = vmatprep.subr.bf16.mxu0 %v464_v0 }
  0x2d   :  { %387 = vmatpush3.bf16.msra.mxu1 %v427_v10 }
  0x2e   :  { %388 = vmatprep.subr.bf16.mxu1 %v464_v0  ;;  %403 = vmatpush3.bf16.msra.mxu0 %v433_v16 }
  0x2f   :  { %404 = vmatprep.subr.bf16.mxu0 %v464_v0 }
  0x31   :  { %389 = vmatpush3.bf16.msra.mxu1 %v428_v11 }
  0x32   :  { %405 = vmatpush3.bf16.msra.mxu0 %v434_v17 }
  0x33   :  { %406 = vmatprep.subr.bf16.mxu0 %v464_v0 }
  0x36   :  { %407 = vmatpush3.bf16.msra.mxu0 %v435_v26 }
  0x37   :  { %408 = vmatprep.subr.bf16.mxu0 %v464_v0 }
  0x3a   :  { %409 = vmatpush3.bf16.msra.mxu0 %v436_v27 }
  0xef   :  { %v89_v19 = vpop.f32.mrb[0].mxu0 }
  0xf0   :  { %v90_v20 = vadd.f32 %v323_v18, %v89_v19  ;;  %v372_v21 = vpop.f32.mrb[1].mxu0 }
  0xf1   :  { %v92_v22 = vpop.f32.mrb[2].mxu0 }
  0xf2   :  { %v95_v23 = vmax.f32 %v90_v20, 0.0  ;;  %v373_v24 = vpop.f32.mrb[3].mxu0 }
  0xf4   :  { %v96_v25 = vpack.c.bf16 %v95_v23, %v95_v23 }
  0xf6   :  { %391 = vmatmul.mubr.bf16.vlgmr.msra.gmra.mrb[0].mxu1 %v96_v25 }
 0x1c9   :  { %v200_v29 = vpop.f32.mrb[0].mxu1 }
 0x1ca   :  { %v201_v30 = vadd.f32 %v327_v28, %v200_v29  ;;  %v392_v31 = vpop.f32.mrb[1].mxu1 }
 0x1cb   :  { %v203_v32 = vpop.f32.mrb[2].mxu1 }
 0x1cc   :  { %v206_v33 = vmax.f32 %v201_v30, 0.0  ;;  %v393_v34 = vpop.f32.mrb[3].mxu1 }
 0x1ce   :  { %v207_v35 = vpack.c.bf16 %v206_v33, %v206_v33 }
 0x1d0   :  { %411 = vmatmul.mubr.bf16.vlgmr.msra.gmra.mrb[4].mxu0 %v207_v35 }
 0x2a3   :  { %v311_v37 = vpop.f32.mrb[4].mxu0 }
 0x2a4   :  { %v312_v38 = vadd.f32 %v336_v36, %v311_v37  ;;  %v412_v39 = vpop.f32.mrb[5].mxu0 }
 0x2a5   :  { %v314_v40 = vpop.f32.mrb[6].mxu0 }
 0x2a6   :  { %317 = vst.msk [vmem:[%s542_s3] sm:$0xff] %vm51_vm1, %v312_v38  ;;  %v413_v41 = vpop.f32.mrb[7].mxu0 }
 0x2a7   :  { %322 = vsyncpa [#allocation3], 1 }

</bundles_post_ra>
